<compile_context>
chip_gen: v6e
topology: v6e:2x2x1
jax: 0.10.0
libtpu: 0.0.40
codegen_flags: <defaults>
</compile_context>

<pallas_src>
import jax
import jax.numpy as jnp
from jax import lax
from jax.experimental import pallas as pl
from jax.experimental.pallas import tpu as pltpu


def _round_up(n, m):
    return ((n + m - 1) // m) * m


# ---------------------------------------------------------------------------
# Hardware probing (best effort; conservative fallbacks so the code always runs).
# ---------------------------------------------------------------------------
def _tpu_hw():
    vmem_bytes = 64 << 20          # conservative default: v7x per-TC VMEM
    num_tc = 1                     # v5e / v6e: one TensorCore per chip
    try:
        info = pltpu.get_tpu_info()
        cap = getattr(info, "vmem_capacity_bytes", None)
        if isinstance(cap, (int, float)) and cap > 0:
            vmem_bytes = int(cap)
    except Exception:
        pass
    try:
        kind = str(getattr(jax.devices()[0], "device_kind", "")).lower()
        if "v7" in kind:
            num_tc = 2
    except Exception:
        pass
    return vmem_bytes, num_tc


# ---------------------------------------------------------------------------
# One-time layout plumbing for the weights (hoist out of the per-call path).
# ---------------------------------------------------------------------------
def prepare_params(params, matmul_dtype=jnp.bfloat16):
    """Pad feature dims to the 128-lane grid and cast MXU operands once.

    Weights are stored [fan_in, fan_out]. W3 is kept as a (1, h2p) row in the
    matmul dtype so layer 3 can be computed as w3t . h^T, which yields the
    logits lane-dense ((1, tile), batch on the lane axis)."""
    w1, b1, w2, b2, w3, b3 = params
    in_f, h1 = w1.shape
    h2 = w2.shape[1]
    in_fp, h1p, h2p = (_round_up(d, 128) for d in (in_f, h1, h2))
    mm = jnp.dtype(matmul_dtype)

    w1p = jnp.zeros((in_fp, h1p), mm).at[:in_f, :h1].set(w1.astype(mm))
    w2p = jnp.zeros((h1p, h2p), mm).at[:h1, :h2].set(w2.astype(mm))
    w3t = jnp.zeros((1, h2p), mm).at[:, :h2].set(w3.reshape(1, h2).astype(mm))
    b1p = jnp.zeros((1, h1p), jnp.float32).at[:, :h1].set(
        b1.reshape(1, h1).astype(jnp.float32))
    b2p = jnp.zeros((1, h2p), jnp.float32).at[:, :h2].set(
        b2.reshape(1, h2).astype(jnp.float32))
    b3p = b3.reshape(1, 1).astype(jnp.float32)

    return {
        "in_f": in_f, "in_fp": in_fp, "h1p": h1p, "h2p": h2p,
        "dtype": mm,
        "tensors": (w1p, b1p, w2p, b2p, w3t, b3p),
    }


# ---------------------------------------------------------------------------
# Fused MLP kernel: one batch tile per grid step, all three layers in VMEM.
# ---------------------------------------------------------------------------
def _mlp_kernel(x_ref, w1_ref, b1_ref, w2_ref, b2_ref, w3t_ref, b3_ref, o_ref):
    mm = w1_ref.dtype

    # Layer 1: cast the f32 x tile to the MXU dtype in-kernel (no host-side bf16
    # copy of x); f32 accumulation; bias + ReLU in f32 (portable to v5e).
    h = jnp.dot(x_ref[...].astype(mm), w1_ref[...],
                preferred_element_type=jnp.float32)
    h = jnp.maximum(h + b1_ref[...], 0.0)
    # Dropout is identity in eval mode.

    # Layer 2: Linear + ReLU.
    h = jnp.dot(h.astype(mm), w2_ref[...], preferred_element_type=jnp.float32)
    h = jnp.maximum(h + b2_ref[...], 0.0)

    # Layer 3: (1, h2p) . (tile, h2p)^T -> (1, tile). Both operands in the matmul
    # dtype (single MXU pass), f32 accumulation; result is the lane-dense logits
    # row (batch on lanes), so the store below is unmasked for tile >= 128.
    logits = lax.dot_general(
        w3t_ref[...], h.astype(mm),
        dimension_numbers=(((1,), (1,)), ((), ())),
        preferred_element_type=jnp.float32)
    logits = logits + b3_ref[...]

    # Exact sigmoid: the divide only touches a single (1, tile) row, so it is ~free.
    o_ref[...] = (1.0 / (1.0 + jnp.exp(-logits))).astype(o_ref.dtype)


# ---------------------------------------------------------------------------
# Chip-aware batch-tile selection.
# ---------------------------------------------------------------------------
def _pick_batch_tile(B, in_fp, h1p, h2p, *, vmem_bytes, num_tc, weight_bytes,
                     block_b=None):
    if block_b is None:
        # 128 MiB parts (v5e/v6e) can afford 1024-row tiles; 64 MiB (v7x) -> 512.
        block_b = 1024 if vmem_bytes >= (100 << 20) else 512
    block_b = max(128, _round_up(block_b, 128))

    budget = int(0.85 * vmem_bytes)   # leave headroom for Mosaic internal scratch

    def est_bytes(tile):
        x_bytes = 2 * tile * in_fp * 4          # double-buffered f32 x tile
        act_bytes = tile * (h1p + h2p) * 6      # f32 activations + bf16 casts
        out_bytes = 2 * tile * 4
        return x_bytes + weight_bytes + act_bytes + out_bytes + (2 << 20)

    if B <= block_b:
        tile = max(8, _round_up(B, 8))          # single step: block == padded dims
    else:
        tile = block_b

    # Split a modest batch into >= 2 "parallel" grid steps only on a 2-TC chip
    # (v7x megacore). On single-TC v5e/v6e extra steps are a serial loop: pure
    # per-step overhead with no parallelism gained.
    if num_tc >= 2 and B >= 256 and _round_up(B, tile) // tile < 2:
        tile = max(128, _round_up(pl.cdiv(B, 2), 128))

    # Shrink the tile if the (single-buffered-weights) estimate exceeds the budget.
    while tile > 128 and est_bytes(tile) > budget:
        tile = max(128, _round_up(tile // 2, 128))

    return tile, _round_up(B, tile), est_bytes(tile), budget


# ---------------------------------------------------------------------------
# Forward wrapper. `prepared` comes from prepare_params() (call it once).
# ---------------------------------------------------------------------------
def adversarial_network_forward(x, prepared, *, block_b=None, x_buffers=2):
    """Fused forward of AdversarialNetwork. x: [B, in_feature] f32 -> [B, 1] f32."""
    w1p, b1p, w2p, b2p, w3t, b3p = prepared["tensors"]
    in_f, in_fp = prepared["in_f"], prepared["in_fp"]
    h1p, h2p = prepared["h1p"], prepared["h2p"]
    B = x.shape[0]
    assert x.shape[1] == in_f, "feature dim mismatch vs prepared params"

    vmem_bytes, num_tc = _tpu_hw()
    nbytes = lambda a: a.size * a.dtype.itemsize
    weight_bytes = sum(nbytes(a) for a in prepared["tensors"])

    tile, b_pad, vmem_est, budget = _pick_batch_tile(
        B, in_fp, h1p, h2p, vmem_bytes=vmem_bytes, num_tc=num_tc,
        weight_bytes=weight_bytes, block_b=block_b)

    # x stays f32: only zero-pad batch to the tile / features to the lane grid.
    if (b_pad, in_fp) != (B, in_f):
        xp = jnp.zeros((b_pad, in_fp), x.dtype).at[:B, :in_f].set(x)
    else:
        xp = x

    grid = (b_pad // tile,)

    # Deepen the x pipeline when there are many grid steps (mem-bound small-hidden
    # case) and VMEM still has headroom for one more buffer.
    if grid[0] >= 4 and vmem_est + tile * in_fp * 4 <= budget:
        x_buffers = max(x_buffers, 3)

    # Grid-invariant blocks: single-buffered (they never change across the grid,
    # so 2-deep pipelining would only double their VMEM footprint).
    single = lambda shape: pl.BlockSpec(shape, lambda i: (0, 0),
                                        pipeline_mode=pl.Buffered(1))

    flops = 2 * b_pad * (in_fp * h1p + h1p * h2p + h2p)
    bytes_accessed = nbytes(xp) + weight_bytes + b_pad * 4
    vmem_limit = int(min(budget, max(int(1.5 * vmem_est), 32 << 20)))

    out = pl.pallas_call(
        _mlp_kernel,
        out_shape=jax.ShapeDtypeStruct((1, b_pad), jnp.float32),
        grid_spec=pltpu.PrefetchScalarGridSpec(
            num_scalar_prefetch=0,
            grid=grid,
            in_specs=[
                pl.BlockSpec((tile, in_fp), lambda i: (i, 0),
                             pipeline_mode=pl.Buffered(x_buffers)),  # x tile (f32)
                single((in_fp, h1p)),                                # W1
                single((1, h1p)),                                    # b1
                single((h1p, h2p)),                                  # W2
                single((1, h2p)),                                    # b2
                single((1, h2p)),                                    # W3^T row
                single((1, 1)),                                      # b3
            ],
            out_specs=pl.BlockSpec((1, tile), lambda i: (0, i)),     # lane-dense
        ),
        compiler_params=pltpu.CompilerParams(
            dimension_semantics=("parallel",),
            vmem_limit_bytes=vmem_limit,
        ),
        cost_estimate=pl.CostEstimate(
            flops=flops,
            transcendentals=b_pad,
            bytes_accessed=bytes_accessed,
        ),
    )(xp, w1p, b1p, w2p, b2p, w3t, b3p)

    # Lane-dense (1, B_pad) -> (B, 1); drop the batch padding (free layout plumbing).
    return out.reshape(b_pad, 1)[:B]


# ---------------------------------------------------------------------------
# Reference / init helpers.
# ---------------------------------------------------------------------------
def init_params(key, in_feature, hidden_size1, hidden_size2):
    """Matches init_weights: xavier_normal_ weights, zero biases.
    Weights stored as [fan_in, fan_out] (transpose of PyTorch's [out, in])."""
    def xavier_normal(k, fan_in, fan_out):
        std = (2.0 / (fan_in + fan_out)) ** 0.5
        return std * jax.random.normal(k, (fan_in, fan_out), dtype=jnp.float32)

    k1, k2, k3 = jax.random.split(key, 3)
    w1 = xavier_normal(k1, in_feature, hidden_size1)
    b1 = jnp.zeros((1, hidden_size1), jnp.float32)
    w2 = xavier_normal(k2, hidden_size1, hidden_size2)
    b2 = jnp.zeros((1, hidden_size2), jnp.float32)
    w3 = xavier_normal(k3, hidden_size2, 1)
    b3 = jnp.zeros((1, 1), jnp.float32)
    return (w1, b1, w2, b2, w3, b3)


def reference_forward(x, params):
    w1, b1, w2, b2, w3, b3 = params
    h = jnp.maximum(x @ w1 + b1, 0.0)
    h = jnp.maximum(h @ w2 + b2, 0.0)
    return jax.nn.sigmoid(h @ w3 + b3)


# TODO(synk): gradient-reversal hook (grl_hook) + iter_num/coeff bookkeeping are
# training/backward-only and intentionally not part of this forward kernel.

if __name__ == "__main__":
    key = jax.random.PRNGKey(0)
    kx, kp = jax.random.split(key)

    # Small shapes; deliberately not multiples of 8/128 to exercise the padding paths.
    B, in_feature, hidden1, hidden2 = 10, 48, 96, 32
    x = jax.random.normal(kx, (B, in_feature), dtype=jnp.float32)
    params = init_params(kp, in_feature, hidden1, hidden2)
    y_ref = reference_forward(x, params)

    # f32-MXU path (tight check; exact sigmoid).
    prep_f32 = prepare_params(params, matmul_dtype=jnp.float32)
    y_f32 = jax.block_until_ready(adversarial_network_forward(x, prep_f32))
    assert y_f32.shape == (B, 1)
    assert jnp.allclose(y_f32, y_ref, atol=5e-3, rtol=0), "f32 mismatch vs reference"

    # Default bf16-MXU path (weights prepared once, reused across calls).
    prep_bf16 = prepare_params(params)
    y_bf16 = jax.block_until_ready(adversarial_network_forward(x, prep_bf16))
    assert y_bf16.shape == (B, 1)
    assert jnp.allclose(y_bf16, y_ref, atol=3e-2, rtol=0), "bf16 mismatch vs reference"

    # Larger batch with a forced small tile to exercise the multi-step grid path
    # (and the single-buffered weight blocks across grid steps).
    B2 = 384
    x2 = jax.random.normal(kx, (B2, in_feature), dtype=jnp.float32)
    y2 = jax.block_until_ready(
        adversarial_network_forward(x2, prep_bf16, block_b=128))
    assert y2.shape == (B2, 1)
    assert jnp.allclose(y2, reference_forward(x2, params), atol=3e-2, rtol=0), \
        "bf16 multi-tile mismatch vs reference"

    print("KERNEL_OK")
</pallas_src>

<mosaic_0001>
module attributes {stable_mosaic.version = 11 : i64} {
  func.func @_mlp_kernel(%arg0: i32, %arg1: memref<16x128xf32, #tpu.memory_space<vmem>>, %arg2: memref<128x128xf32, #tpu.memory_space<vmem>>, %arg3: memref<1x128xf32, #tpu.memory_space<vmem>>, %arg4: memref<128x128xf32, #tpu.memory_space<vmem>>, %arg5: memref<1x128xf32, #tpu.memory_space<vmem>>, %arg6: memref<1x128xf32, #tpu.memory_space<vmem>>, %arg7: memref<1x1xf32, #tpu.memory_space<vmem>>, %arg8: memref<1x16xf32, #tpu.memory_space<vmem>>) attributes {dimension_semantics = [#tpu.dimension_semantics<parallel>], iteration_bounds = array<i64: 1>, scalar_prefetch = 0 : i64, scratch_operands = 0 : i64, tpu.core_type = #tpu.core_type<tc>, window_params = [{pipeline_mode = #tpu.pipeline_mode<double_buffered>, transform_indices = @transform_0, window_bounds = array<i64: 16, 128>}, {pipeline_mode = #tpu.pipeline_mode<synchronous>, transform_indices = @transform_1, window_bounds = array<i64: 128, 128>}, {pipeline_mode = #tpu.pipeline_mode<synchronous>, transform_indices = @transform_2, window_bounds = array<i64: 1, 128>}, {pipeline_mode = #tpu.pipeline_mode<synchronous>, transform_indices = @transform_3, window_bounds = array<i64: 128, 128>}, {pipeline_mode = #tpu.pipeline_mode<synchronous>, transform_indices = @transform_4, window_bounds = array<i64: 1, 128>}, {pipeline_mode = #tpu.pipeline_mode<synchronous>, transform_indices = @transform_5, window_bounds = array<i64: 1, 128>}, {pipeline_mode = #tpu.pipeline_mode<synchronous>, transform_indices = @transform_6, window_bounds = array<i64: 1, 1>}, {transform_indices = @transform_7, window_bounds = array<i64: 1, 16>}]} {
    %c0 = arith.constant 0 : index
    %c0_0 = arith.constant 0 : index
    %0 = vector.load %arg1[%c0, %c0_0] : memref<16x128xf32, #tpu.memory_space<vmem>>, vector<16x128xf32>
    %c0_1 = arith.constant 0 : index
    %c0_2 = arith.constant 0 : index
    %1 = vector.load %arg2[%c0_1, %c0_2] : memref<128x128xf32, #tpu.memory_space<vmem>>, vector<128x128xf32>
    %cst = arith.constant dense<0.000000e+00> : vector<16x128xf32>
    %2 = tpu.matmul %0, %1, %cst {dimension_numbers = #tpu.dot_dimension_numbers<[1], [0], [0], [1], [0, 0, 1, 1], [], []>} : vector<16x128xf32>, vector<128x128xf32>, vector<16x128xf32> -> vector<16x128xf32>
    %c0_3 = arith.constant 0 : index
    %c0_4 = arith.constant 0 : index
    %3 = vector.load %arg3[%c0_3, %c0_4] : memref<1x128xf32, #tpu.memory_space<vmem>>, vector<1x128xf32>
    %4 = vector.broadcast %3 : vector<1x128xf32> to vector<16x128xf32>
    %5 = arith.addf %2, %4 : vector<16x128xf32>
    %cst_5 = arith.constant 0.000000e+00 : f32
    %6 = vector.broadcast %cst_5 : f32 to vector<16x128xf32>
    %7 = arith.maximumf %5, %6 : vector<16x128xf32>
    %c0_6 = arith.constant 0 : index
    %c0_7 = arith.constant 0 : index
    %8 = vector.load %arg4[%c0_6, %c0_7] : memref<128x128xf32, #tpu.memory_space<vmem>>, vector<128x128xf32>
    %cst_8 = arith.constant dense<0.000000e+00> : vector<16x128xf32>
    %9 = tpu.matmul %7, %8, %cst_8 {dimension_numbers = #tpu.dot_dimension_numbers<[1], [0], [0], [1], [0, 0, 1, 1], [], []>} : vector<16x128xf32>, vector<128x128xf32>, vector<16x128xf32> -> vector<16x128xf32>
    %c0_9 = arith.constant 0 : index
    %c0_10 = arith.constant 0 : index
    %10 = vector.load %arg5[%c0_9, %c0_10] : memref<1x128xf32, #tpu.memory_space<vmem>>, vector<1x128xf32>
    %11 = vector.broadcast %10 : vector<1x128xf32> to vector<16x128xf32>
    %12 = arith.addf %9, %11 : vector<16x128xf32>
    %cst_11 = arith.constant 0.000000e+00 : f32
    %13 = vector.broadcast %cst_11 : f32 to vector<16x128xf32>
    %14 = arith.maximumf %12, %13 : vector<16x128xf32>
    %c0_12 = arith.constant 0 : index
    %c0_13 = arith.constant 0 : index
    %15 = vector.load %arg6[%c0_12, %c0_13] : memref<1x128xf32, #tpu.memory_space<vmem>>, vector<1x128xf32>
    %cst_14 = arith.constant dense<0.000000e+00> : vector<1x16xf32>
    %16 = tpu.matmul %15, %14, %cst_14 {dimension_numbers = #tpu.dot_dimension_numbers<[1], [1], [0], [0], [0, 0, 1, 0], [], []>} : vector<1x128xf32>, vector<16x128xf32>, vector<1x16xf32> -> vector<1x16xf32>
    %c0_15 = arith.constant 0 : index
    %c0_16 = arith.constant 0 : index
    %17 = vector.load %arg7[%c0_15, %c0_16] : memref<1x1xf32, #tpu.memory_space<vmem>>, vector<1x1xf32>
    %18 = vector.broadcast %17 : vector<1x1xf32> to vector<1x16xf32>
    %19 = arith.addf %16, %18 : vector<1x16xf32>
    %cst_17 = arith.constant 0.000000e+00 : f32
    %20 = vector.broadcast %cst_17 : f32 to vector<1x16xf32>
    %21 = arith.subf %20, %19 : vector<1x16xf32>
    %22 = math.exp %21 : vector<1x16xf32>
    %cst_18 = arith.constant 1.000000e+00 : f32
    %23 = vector.broadcast %cst_18 : f32 to vector<1x16xf32>
    %24 = arith.addf %23, %22 : vector<1x16xf32>
    %cst_19 = arith.constant 1.000000e+00 : f32
    %25 = vector.broadcast %cst_19 : f32 to vector<1x16xf32>
    %26 = arith.divf %25, %24 : vector<1x16xf32>
    %c0_20 = arith.constant 0 : index
    %c0_21 = arith.constant 0 : index
    %27 = vector.load %arg8[%c0_20, %c0_21] : memref<1x16xf32, #tpu.memory_space<vmem>>, vector<1x16xf32>
    tpu.vector_store %arg8[%c0_20, %c0_21], %26 {strides = array<i32>} : memref<1x16xf32, #tpu.memory_space<vmem>>, vector<1x16xf32>,
    return
  }
  func.func @transform_0(%arg0: i32) -> (i32, i32) {
    %c0_i32 = arith.constant 0 : i32
    %c0_i32_0 = arith.constant 0 : i32
    return %arg0, %c0_i32 : i32, i32
  }
  func.func @transform_1(%arg0: i32) -> (i32, i32) {
    %c0_i32 = arith.constant 0 : i32
    %c0_i32_0 = arith.constant 0 : i32
    %c0_i32_1 = arith.constant 0 : i32
    return %c0_i32, %c0_i32_0 : i32, i32
  }
  func.func @transform_2(%arg0: i32) -> (i32, i32) {
    %c0_i32 = arith.constant 0 : i32
    %c0_i32_0 = arith.constant 0 : i32
    %c0_i32_1 = arith.constant 0 : i32
    return %c0_i32, %c0_i32_0 : i32, i32
  }
  func.func @transform_3(%arg0: i32) -> (i32, i32) {
    %c0_i32 = arith.constant 0 : i32
    %c0_i32_0 = arith.constant 0 : i32
    %c0_i32_1 = arith.constant 0 : i32
    return %c0_i32, %c0_i32_0 : i32, i32
  }
  func.func @transform_4(%arg0: i32) -> (i32, i32) {
    %c0_i32 = arith.constant 0 : i32
    %c0_i32_0 = arith.constant 0 : i32
    %c0_i32_1 = arith.constant 0 : i32
    return %c0_i32, %c0_i32_0 : i32, i32
  }
  func.func @transform_5(%arg0: i32) -> (i32, i32) {
    %c0_i32 = arith.constant 0 : i32
    %c0_i32_0 = arith.constant 0 : i32
    %c0_i32_1 = arith.constant 0 : i32
    return %c0_i32, %c0_i32_0 : i32, i32
  }
  func.func @transform_6(%arg0: i32) -> (i32, i32) {
    %c0_i32 = arith.constant 0 : i32
    %c0_i32_0 = arith.constant 0 : i32
    %c0_i32_1 = arith.constant 0 : i32
    return %c0_i32, %c0_i32_0 : i32, i32
  }
  func.func @transform_7(%arg0: i32) -> (i32, i32) {
    %c0_i32 = arith.constant 0 : i32
    %c0_i32_0 = arith.constant 0 : i32
    return %c0_i32, %arg0 : i32, i32
  }
}

</mosaic_0001>

<bundles_post_ra>
// kernel: tpu_custom_call.1
= control target key start
LH: loop header
LB: loop body
LE: loop exit
PB: predicated region body
PF: predicated region fallthrough
CT: control target
= control target key end

     0   :  { %s668_s0 = inlined_call_operand.hbm [shape: f32[16,128], index: 0, kind: input, shape index: {}]   ;;  %s669_s1 = inlined_call_operand.hbm [shape: f32[128,128], index: 1, kind: input, shape index: {}]   ;;  %s670_s2 = inlined_call_operand.vmem [shape: f32[1,128], index: 2, kind: input, shape index: {}]   ;;  %s671_s3 = inlined_call_operand.hbm [shape: f32[128,128], index: 3, kind: input, shape index: {}]   ;;  %s672_s4 = inlined_call_operand.vmem [shape: f32[1,128], index: 4, kind: input, shape index: {}]   ;;  %s673_s5 = inlined_call_operand.vmem [shape: f32[1,128], index: 5, kind: input, shape index: {}]   ;;  %s674_s6 = inlined_call_operand.<no memory space> [shape: f32[1,1], index: 6, kind: input, shape index: {}]   ;;  %s675_s7 = inlined_call_operand.hbm [shape: f32[1,16], index: 7, kind: output, shape index: {}]  }
   0x1   :  { %v12_v0 = vstv %s674_s6 }
   0x2   :  { %13 = vst [vmem:[#allocation2] sm:$0x1] %v12_v0 }
   0x3   :  { %14 = vsyncpa [#allocation4], 0 }
   0x4   :  { %15 = vsyncpa [#allocation7], 0 }
   0x5   :  { %16 = vsyncpa [#allocation5], 0  ;;  %s595_s26 = smov [#allocation6]   ;;  %s596_s28 = smov [#allocation3]  }
   0x6   :  { %s34_s27 = sshll.u32 %s595_s26, 4  ;;  %s22_s29 = sshll.u32 %s596_s28, 4  ;;  %s35_s27 = int_to_ptr.vmem [resolvable:$true] %s34_s27  ;;  %s23_s29 = int_to_ptr.vmem [resolvable:$true] %s22_s29 }
   0x7   :  { %s517_s30 = scalar_lea.vmem %s35_s27, 2048  ;;  %p522_p1 = scmp.lt.s32.totalorder %s35_s27, %s35_s27 }
   0x8   :  { %p518_p0 = scmp.ne.s32.totalorder %s35_s27, %s517_s30  ;;  %p523_p2 = scmp.lt.s32.totalorder %s517_s30, %s517_s30 }
   0xa   :  { %p524_p3 = por %p523_p2, %p522_p1 }
   0xc   :  { %p525_p4 = pnand %p524_p3, %p518_p0 }
   0xe   :  { %528 = shalt.err (!%p525_p4)
}
   0xf   :  { %s597_s8 = smov 128   ;;  %s598_s9 = smov 8  }
  0x10   :  { %40 = dma.hbm_to_vmem [thread:$0]  %s669_s1, 2048, %s35_s27, [#allocation7], %s597_s8, %s597_s8, %s598_s9  }
  0x11   :  { %s537_s11 = scalar_lea.vmem %s23_s29, 256  ;;  %p542_p6 = scmp.lt.s32.totalorder %s23_s29, %s23_s29 }
  0x12   :  { %p538_p5 = scmp.ne.s32.totalorder %s23_s29, %s537_s11  ;;  %p543_p7 = scmp.lt.s32.totalorder %s537_s11, %s537_s11 }
  0x14   :  { %p544_p8 = por %p543_p7, %p542_p6 }
  0x16   :  { %p545_p9 = pnand %p544_p8, %p538_p5 }
  0x18   :  { %548 = shalt.err (!%p545_p9)
}
  0x19   :  { %28 = dma.hbm_to_vmem [thread:$0]  %s668_s0, 256, %s23_s29, [#allocation4], %s597_s8, %s597_s8, %s598_s9  }
  0x1a   :  { %s599_s14 = smov [#allocation8]  }
  0x1b   :  { %s48_s15 = sshll.u32 %s599_s14, 4  ;;  %s49_s15 = int_to_ptr.vmem [resolvable:$true] %s48_s15 }
  0x1c   :  { %s557_s16 = scalar_lea.vmem %s49_s15, 2048  ;;  %p562_p11 = scmp.lt.s32.totalorder %s49_s15, %s49_s15 }
  0x1d   :  { %p558_p10 = scmp.ne.s32.totalorder %s49_s15, %s557_s16  ;;  %p563_p12 = scmp.lt.s32.totalorder %s557_s16, %s557_s16 }
  0x1f   :  { %p564_p13 = por %p563_p12, %p562_p11 }
  0x21   :  { %p565_p0 = pnand %p564_p13, %p558_p10 }
  0x23   :  { %568 = shalt.err (!%p565_p0)
}
  0x24   :  { %54 = dma.hbm_to_vmem [thread:$0]  %s671_s3, 2048, %s49_s15, [#allocation7], %s597_s8, %s597_s8, %s598_s9  }
  0x25   :  { %589 = dma.done.wait [#allocation4], 256  }
  0x26   :  { %590 = vsyncadd [#allocation4], 4294967040 }
  0x27   :  { %591 = dma.done.wait [#allocation7], 4096  }
  0x28   :  { %592 = vsyncadd [#allocation7], 4294963200  ;;  %v87_v1 = vld [vmem:[#allocation6 + $0x78] sm:$0xff]  ;;  %v86_v2 = vld [vmem:[#allocation6 + $0x70] sm:$0xff]  ;;  %v600_v42 = vmov 0.0   ;;  %vm601_vm0 = vmmov 0   ;;  %v279_v53 = vlaneseq }
  0x29   :  { %418 = vmatprep.subr.mxu0 %v87_v1  ;;  %v85_v3 = vld [vmem:[#allocation6 + $0x68] sm:$0xff]  ;;  %v84_v4 = vld [vmem:[#allocation6 + $0x60] sm:$0xff]  ;;  %v70_v5 = vld [vmem:[#allocation3] sm:$0xff]  ;;  %v602_v44 = vmov 0   ;;  %vm359_vm1 = vcmask 122880  }
  0x2a   :  { %419 = vmatpush3.msra.mxu0 %v87_v1  ;;  %v83_v6 = vld [vmem:[#allocation6 + $0x58] sm:$0xff]  ;;  %450 = vmatprep.mubr.f32.mxu0 %v70_v5  ;;  %v186_v8 = vld [vmem:[#allocation8 + $0x70] sm:$0xff]  ;;  %v185_v10 = vld [vmem:[#allocation8 + $0x68] sm:$0xff]  ;;  %v280_v54 = vshrl.u32 %v279_v53, 7 }
  0x2b   :  { %420 = vmatprep.subr.mxu0 %v86_v2  ;;  %v187_v7 = vld [vmem:[#allocation8 + $0x78] sm:$0xff]  ;;  %v82_v9 = vld [vmem:[#allocation6 + $0x50] sm:$0xff]  ;;  %v81_v11 = vld [vmem:[#allocation6 + $0x48] sm:$0xff]  ;;  %504 = vset.pattern.permute.xlu0 %v602_v44 }
  0x2c   :  { %421 = vmatpush3.msra.mxu0 %v86_v2  ;;  %453 = vmatprep.subr.mxu1 %v187_v7  ;;  %v184_v12 = vld [vmem:[#allocation8 + $0x60] sm:$0xff]  ;;  %v183_v14 = vld [vmem:[#allocation8 + $0x58] sm:$0xff]  ;;  %v182_v16 = vld [vmem:[#allocation8 + $0x50] sm:$0xff]  ;;  %v281_v55 = vsub.s32 0, %v280_v54 }
  0x2d   :  { %422 = vmatprep.subr.mxu0 %v85_v3  ;;  %454 = vmatpush3.msra.mxu1 %v187_v7  ;;  %v80_v13 = vld [vmem:[#allocation6 + $0x40] sm:$0xff]  ;;  %v79_v15 = vld [vmem:[#allocation6 + $0x38] sm:$0xff]  ;;  %v78_v17 = vld [vmem:[#allocation6 + $0x30] sm:$0xff] }
  0x2e   :  { %423 = vmatpush3.msra.mxu0 %v85_v3  ;;  %455 = vmatprep.subr.mxu1 %v186_v8  ;;  %v181_v18 = vld [vmem:[#allocation8 + $0x48] sm:$0xff]  ;;  %v180_v20 = vld [vmem:[#allocation8 + $0x40] sm:$0xff]  ;;  %v179_v22 = vld [vmem:[#allocation8 + $0x38] sm:$0xff] }
  0x2f   :  { %424 = vmatprep.subr.mxu0 %v84_v4  ;;  %456 = vmatpush3.msra.mxu1 %v186_v8  ;;  %v77_v19 = vld [vmem:[#allocation6 + $0x28] sm:$0xff]  ;;  %v76_v21 = vld [vmem:[#allocation6 + $0x20] sm:$0xff]  ;;  %v75_v23 = vld [vmem:[#allocation6 + $0x18] sm:$0xff] }
  0x30   :  { %425 = vmatpush3.msra.mxu0 %v84_v4  ;;  %457 = vmatprep.subr.mxu1 %v185_v10  ;;  %v178_v24 = vld [vmem:[#allocation8 + $0x30] sm:$0xff]  ;;  %v177_v26 = vld [vmem:[#allocation8 + $0x28] sm:$0xff]  ;;  %v176_v28 = vld [vmem:[#allocation8 + $0x20] sm:$0xff] }
  0x31   :  { %426 = vmatprep.subr.mxu0 %v83_v6  ;;  %458 = vmatpush3.msra.mxu1 %v185_v10  ;;  %v74_v25 = vld [vmem:[#allocation6 + $0x10] sm:$0xff]  ;;  %v73_v27 = vld [vmem:[#allocation6 + $0x8] sm:$0xff]  ;;  %v72_v29 = vld [vmem:[#allocation6] sm:$0xff] }
  0x32   :  { %427 = vmatpush3.msra.mxu0 %v83_v6  ;;  %459 = vmatprep.subr.mxu1 %v184_v12  ;;  %v71_v30 = vld [vmem:[#allocation3 + $0x8] sm:$0xff]  ;;  %v174_v32 = vld [vmem:[#allocation8 + $0x10] sm:$0xff]  ;;  %v173_v33 = vld [vmem:[#allocation8 + $0x8] sm:$0xff] }
  0x33   :  { %428 = vmatprep.subr.mxu0 %v82_v9  ;;  %460 = vmatpush3.msra.mxu1 %v184_v12  ;;  %v175_v31 = vld [vmem:[#allocation8 + $0x18] sm:$0xff]  ;;  %v172_v34 = vld [vmem:[#allocation8] sm:$0xff]  ;;  %v377_v35 = vld [vmem:[%s670_s2] ss:$0 sm:$0xff] }
  0x34   :  { %429 = vmatpush3.msra.mxu0 %v82_v9  ;;  %461 = vmatprep.subr.mxu1 %v183_v14  ;;  %v273_v43 = vld [vmem:[#allocation2] sm:$0x1] }
  0x35   :  { %430 = vmatprep.subr.mxu0 %v81_v11  ;;  %462 = vmatpush3.msra.mxu1 %v183_v14  ;;  %v378_v45 = vld [vmem:[%s672_s4] ss:$0 sm:$0xff]  ;;  %s603_s4 = smov [#allocation9]  }
  0x36   :  { %431 = vmatpush3.msra.mxu0 %v81_v11  ;;  %463 = vmatprep.subr.mxu1 %v182_v16  ;;  %v272_v52 = vld [vmem:[%s673_s5] sm:$0x1]  ;;  %s367_s21 = sshll.u32 %s603_s4, 4  ;;  %s368_s21 = int_to_ptr.vmem [resolvable:$true] %s367_s21 }
  0x37   :  { %432 = vmatprep.subr.mxu0 %v80_v13  ;;  %464 = vmatpush3.msra.mxu1 %v182_v16  ;;  %s569_s5 = scalar_lea.vmem %s368_s21, 16  ;;  %s573_s22 = scalar_lea.vmem %s368_s21, 32 }
  0x38   :  { %433 = vmatpush3.msra.mxu0 %v80_v13  ;;  %465 = vmatprep.subr.mxu1 %v181_v18  ;;  %p570_p1 = scmp.ne.s32.totalorder %s368_s21, %s569_s5  ;;  %p574_p2 = scmp.lt.s32.totalorder %s368_s21, %s368_s21 }
  0x39   :  { %434 = vmatprep.subr.mxu0 %v79_v15  ;;  %466 = vmatpush3.msra.mxu1 %v181_v18  ;;  %p575_p3 = scmp.lt.s32.totalorder %s573_s22, %s569_s5 }
  0x3a   :  { %435 = vmatpush3.msra.mxu0 %v79_v15  ;;  %467 = vmatprep.subr.mxu1 %v180_v20 }
  0x3b   :  { %436 = vmatprep.subr.mxu0 %v78_v17  ;;  %468 = vmatpush3.msra.mxu1 %v180_v20  ;;  %p576_p4 = por %p575_p3, %p574_p2 }
  0x3c   :  { %437 = vmatpush3.msra.mxu0 %v78_v17  ;;  %469 = vmatprep.subr.mxu1 %v179_v22 }
  0x3d   :  { %438 = vmatprep.subr.mxu0 %v77_v19  ;;  %470 = vmatpush3.msra.mxu1 %v179_v22  ;;  %p577_p5 = pnand %p576_p4, %p570_p1 }
  0x3e   :  { %439 = vmatpush3.msra.mxu0 %v77_v19  ;;  %471 = vmatprep.subr.mxu1 %v178_v24 }
  0x3f   :  { %440 = vmatprep.subr.mxu0 %v76_v21  ;;  %472 = vmatpush3.msra.mxu1 %v178_v24 }
  0x40   :  { %441 = vmatpush3.msra.mxu0 %v76_v21  ;;  %473 = vmatprep.subr.mxu1 %v177_v26 }
  0x41   :  { %442 = vmatprep.subr.mxu0 %v75_v23  ;;  %474 = vmatpush3.msra.mxu1 %v177_v26 }
  0x42   :  { %443 = vmatpush3.msra.mxu0 %v75_v23  ;;  %475 = vmatprep.subr.mxu1 %v176_v28 }
  0x43   :  { %444 = vmatprep.subr.mxu0 %v74_v25  ;;  %476 = vmatpush3.msra.mxu1 %v176_v28 }
  0x44   :  { %445 = vmatpush3.msra.mxu0 %v74_v25  ;;  %477 = vmatprep.subr.mxu1 %v175_v31 }
  0x45   :  { %446 = vmatprep.subr.mxu0 %v73_v27  ;;  %478 = vmatpush3.msra.mxu1 %v175_v31 }
  0x46   :  { %447 = vmatpush3.msra.mxu0 %v73_v27  ;;  %479 = vmatprep.subr.mxu1 %v174_v32 }
  0x47   :  { %448 = vmatprep.subr.mxu0 %v72_v29  ;;  %480 = vmatpush3.msra.mxu1 %v174_v32 }
  0x48   :  { %449 = vmatpush3.msra.mxu0 %v72_v29  ;;  %481 = vmatprep.subr.mxu1 %v173_v33 }
  0x49   :  { %451 = vmatmul.mubr.f32.vlgmr.msra.gmra.mxu0 %v71_v30  ;;  %482 = vmatpush3.msra.mxu1 %v173_v33 }
  0x4a   :  { %483 = vmatprep.subr.mxu1 %v172_v34  ;;  %488 = vmatprep.subr.mxu0 %v600_v42 }
  0x4b   :  { %484 = vmatpush3.msra.mxu1 %v172_v34  ;;  %492 = vmatprep.mubr.msk.f32.mxu0 %vm601_vm0, %v600_v42 }
  0x4c   :  { %276 = vperm.xlu0 %504, %v273_v43  }
  0xc7   :  { %v277_v56 = vpop.permute.xlu0 %276 }
  0xc8   :  { %v282_v57 = vrot.slane %v277_v56, %v281_v55 }
 0x109   :  { %v452_v36 = vpop.f32.mrf.mxu0 }
 0x10a   :  { %v167_v37 = vadd.f32 %v452_v36, %v377_v35 }
 0x10b   :  { %v161_v38 = vpop.f32.mrf.mxu0 }
 0x10c   :  { %v162_v39 = vadd.f32 %v377_v35, %v161_v38  ;;  %v171_v41 = vmax.f32 %v167_v37, 0.0 }
 0x10e   :  { %v170_v40 = vmax.f32 %v162_v39, 0.0 }
 0x110   :  { %485 = vmatprep.mubr.f32.mxu1 %v170_v40 }
 0x111   :  { %486 = vmatmul.mubr.f32.vlgmr.msra.gmra.mxu1 %v171_v41 }
 0x1d1   :  { %v487_v46 = vpop.f32.mrf.mxu1 }
 0x1d2   :  { %v267_v47 = vadd.f32 %v487_v46, %v378_v45 }
 0x1d3   :  { %v261_v48 = vpop.f32.mrf.mxu1 }
 0x1d4   :  { %v271_v49 = vmax.f32 %v267_v47, 0.0  ;;  %v262_v50 = vadd.f32 %v378_v45, %v261_v48 }
 0x1d6   :  { %489 = vmatpush3.xpose.msra.mxu0 %v271_v49  ;;  %v270_v51 = vmax.f32 %v262_v50, 0.0 }
 0x1d7   :  { %490 = vmatprep.subr.mxu0 %v600_v42 }
 0x1da   :  { %491 = vmatpush3.xpose.msra.mxu0 %v270_v51 }
 0x1dd   :  { %493 = vmatmul.mubr.f32.vlgmr.msra.gmra.mxu0 %v272_v52 }
 0x29d   :  { %v349_v58 = vpop.f32.mrf.mxu0 }
 0x29e   :  { %v350_v59 = vadd.f32 %v349_v58, %v282_v57 }
 0x29f   :  { %v494_v60 = vpop.f32.mrf.mxu0 }
 0x2a0   :  { %v353_v61 = vsub.f32 0.0, %v350_v59 }
 0x2a2   :  { %v354_v62 = vmul.f32 1.442695, %v353_v61 }
 0x2a4   :  { %505 = vpow2.f32 %v354_v62 }
 0x2b1   :  { %v506_v63 = vpop.eup %505 }
 0x2b2   :  { %v356_v0 = vadd.f32 1.0, %v506_v63 }
 0x2b4   :  { %507 = vrcp.f32 %v356_v0 }
 0x2c1   :  { %v508_v1 = vpop.eup %507 }
 0x2c2   :  { %360 = vst.msk [vmem:[#allocation9] sm:$0x1] %vm359_vm1, %v508_v1 }
 0x2c3   :  { %580 = shalt.err (!%p577_p5)
}
 0x2c4   :  { %370 = dma.vmem_to_hbm [thread:$0]  %s368_s21, 16, %s675_s7, [#allocation5]  }
 0x2c5   :  { %593 = dma.done.wait [#allocation5], 16  }
 0x2c6   :  { %594 = vsyncadd [#allocation5], 4294967280 }
 0x2c7   :  { %374 = vsyncpa [#allocation4], 1 }
 0x2c8   :  { %375 = vsyncpa [#allocation7], 1 }
 0x2c9   :  { %376 = vsyncpa [#allocation5], 1 }

</bundles_post_ra>
